<compile_context>
chip_gen: v7x
topology: tpu7x:2x2x1
jax: 0.10.0
libtpu: 0.0.40
codegen_flags: <defaults>
</compile_context>

<pallas_src>
import functools

import jax
import jax.numpy as jnp
from jax.experimental import pallas as pl
from jax.experimental.pallas import tpu as pltpu


def _decoder_kernel(z_ref, wih_ref, whh_ref, b_ref, wfc_ref, bfc_ref,
                    out_ref, h_stack, *, seq_len, mxu_dtype):
    """Full decoder forward in one kernel invocation.

    z_ref:   (B, H)      latent (repeated over time by module semantics)
    wih_ref: (H, 4H)     input-to-hidden weights^T, gate order (i, f, o, g)
    whh_ref: (H, 4H)     hidden-to-hidden weights^T, gate order (i, f, o, g)
    b_ref:   (1, 4H)     b_ih + b_hh folded once, gate order (i, f, o, g)
    wfc_ref: (H, I)      fc weight^T
    bfc_ref: (1, I)      fc bias
    out_ref: (B*T, I)    batch-major rows (row = b*T + t)
    h_stack: (B*T, H)    VMEM scratch holding every h_t, batch-major rows
    """
    B, H = z_ref.shape
    T = seq_len

    # Hoisted input projection + folded bias: identical for every timestep.
    gx = (jnp.dot(z_ref[...], wih_ref[...], preferred_element_type=jnp.float32)
          + b_ref[...])                                    # (B, 4H)
    whh = whh_ref[...].astype(mxu_dtype)                   # (H, 4H)

    def step(t, carry):
        h, c = carry
        # The only per-step MXU work on the serial chain.
        gates = gx + jnp.dot(h.astype(mxu_dtype), whh,
                             preferred_element_type=jnp.float32)  # (B, 4H)
        # Gate order is (i, f, o, g): sigmoid over the first 3H lanes only,
        # tanh over the last H lanes only (plus tanh(c) below).
        sig = jax.nn.sigmoid(gates[:, :3 * H])
        i_g = sig[:, 0 * H:1 * H]
        f_g = sig[:, 1 * H:2 * H]
        o_g = sig[:, 2 * H:3 * H]
        g_g = jnp.tanh(gates[:, 3 * H:])
        c_new = f_g * c + i_g * g_g
        h_new = o_g * jnp.tanh(c_new)
        # Stash h_t (batch-major row b*T + t); next iteration does not read
        # these stores, so they sit off the recurrence critical path.
        for b in range(B):
            h_stack[pl.ds(b * T + t, 1), :] = h_new[b:b + 1, :]
        return h_new, c_new

    h0 = jnp.zeros((B, H), jnp.float32)
    c0 = jnp.zeros((B, H), jnp.float32)
    jax.lax.fori_loop(0, T, step, (h0, c0), unroll=min(T, 8))

    # Deferred fc head: one batched matmul + bias, one bulk store.
    y = (jnp.dot(h_stack[...], wfc_ref[...],
                 preferred_element_type=jnp.float32)
         + bfc_ref[...])                                   # (B*T, I)
    out_ref[...] = y.astype(out_ref.dtype)


def _permute_gate_cols(x):
    """Reorder last-dim gate chunks from PyTorch (i, f, g, o) to (i, f, o, g)."""
    i, f, g, o = jnp.split(x, 4, axis=-1)
    return jnp.concatenate([i, f, o, g], axis=-1)


def decoder_forward(z, seq_len, w_ih, w_hh, b_ih, b_hh, w_fc, b_fc,
                    *, mxu_dtype=jnp.float32):
    """z: (B, H) float32.  Returns (B, seq_len, input_size) float32.

    mxu_dtype=jnp.bfloat16 enables bf16 MXU inputs (f32 accumulate) for the
    recurrence dot on v6e/v7x; default f32 keeps exact parity with PyTorch.
    """
    B, H = z.shape
    I = w_fc.shape[0]
    T = int(seq_len)

    # Weight prep (free, outside the kernel): transpose, fold biases, permute
    # gate columns to (i, f, o, g).
    wih_t = _permute_gate_cols(jnp.transpose(w_ih))          # (H, 4H)
    whh_t = _permute_gate_cols(jnp.transpose(w_hh))          # (H, 4H)
    b = _permute_gate_cols((b_ih + b_hh).reshape(1, 4 * H))  # (1, 4H)
    wfc_t = jnp.transpose(w_fc)                              # (H, I)
    bfc = b_fc.reshape(1, I)                                 # (1, I)

    vmem = pl.BlockSpec(memory_space=pltpu.MemorySpace.VMEM)
    out_flat = pl.pallas_call(
        functools.partial(_decoder_kernel, seq_len=T, mxu_dtype=mxu_dtype),
        out_shape=jax.ShapeDtypeStruct((B * T, I), jnp.float32),
        in_specs=[vmem, vmem, vmem, vmem, vmem, vmem],
        out_specs=vmem,
        scratch_shapes=[pltpu.VMEM((B * T, H), jnp.float32)],
    )(z, wih_t, whh_t, b, wfc_t, bfc)

    # Rows are batch-major (b*T + t): reshape only, no transpose, no extra
    # HBM pass.
    return out_flat.reshape(B, T, I)


def decoder_reference(z, seq_len, w_ih, w_hh, b_ih, b_hh, w_fc, b_fc):
    """Pure-JAX reference matching the PyTorch Decoder forward."""
    B, H = z.shape

    def step(carry, _):
        h, c = carry
        gates = z @ w_ih.T + b_ih + h @ w_hh.T + b_hh
        i, f, g, o = jnp.split(gates, 4, axis=-1)
        c = jax.nn.sigmoid(f) * c + jax.nn.sigmoid(i) * jnp.tanh(g)
        h = jax.nn.sigmoid(o) * jnp.tanh(c)
        return (h, c), h

    init = (jnp.zeros((B, H), jnp.float32), jnp.zeros((B, H), jnp.float32))
    _, hs = jax.lax.scan(step, init, None, length=seq_len)     # (T, B, H)
    return jnp.einsum("tbh,ih->bti", hs, w_fc) + b_fc          # (B, T, I)


if __name__ == "__main__":
    # Small shapes consistent with the module: batch=2, seq_len=8,
    # hidden_size=32, input_size=4.
    B, T, H, I = 2, 8, 32, 4

    key = jax.random.PRNGKey(0)
    ks = jax.random.split(key, 7)

    # PyTorch-style init: U(-1/sqrt(H), 1/sqrt(H)).
    bound = 1.0 / (H ** 0.5)
    z = jax.random.normal(ks[0], (B, H), dtype=jnp.float32)
    w_ih = jax.random.uniform(ks[1], (4 * H, H), jnp.float32, -bound, bound)
    w_hh = jax.random.uniform(ks[2], (4 * H, H), jnp.float32, -bound, bound)
    b_ih = jax.random.uniform(ks[3], (4 * H,), jnp.float32, -bound, bound)
    b_hh = jax.random.uniform(ks[4], (4 * H,), jnp.float32, -bound, bound)
    w_fc = jax.random.uniform(ks[5], (I, H), jnp.float32, -bound, bound)
    b_fc = jax.random.uniform(ks[6], (I,), jnp.float32, -bound, bound)

    out = jax.block_until_ready(
        decoder_forward(z, T, w_ih, w_hh, b_ih, b_hh, w_fc, b_fc))
    ref = jax.block_until_ready(
        decoder_reference(z, T, w_ih, w_hh, b_ih, b_hh, w_fc, b_fc))

    assert out.shape == (B, T, I), out.shape
    max_err = jnp.max(jnp.abs(out - ref))
    assert jnp.allclose(out, ref, atol=2e-5, rtol=2e-5), (
        f"max abs err {max_err}")

    print("KERNEL_OK")
</pallas_src>

<mosaic_0001>
module attributes {stable_mosaic.version = 11 : i64} {
  func.func @_decoder_kernel(%arg0: memref<2x32xf32, #tpu.memory_space<vmem>>, %arg1: memref<32x128xf32, #tpu.memory_space<vmem>>, %arg2: memref<32x128xf32, #tpu.memory_space<vmem>>, %arg3: memref<1x128xf32, #tpu.memory_space<vmem>>, %arg4: memref<32x4xf32, #tpu.memory_space<vmem>>, %arg5: memref<1x4xf32, #tpu.memory_space<vmem>>, %arg6: memref<16x4xf32, #tpu.memory_space<vmem>>, %arg7: memref<16x32xf32, #tpu.memory_space<vmem>>) attributes {dimension_semantics = [], scalar_prefetch = 0 : i64, scratch_operands = 1 : i64, tpu.core_type = #tpu.core_type<tc>} {
    %c0 = arith.constant 0 : index
    %c0_0 = arith.constant 0 : index
    %0 = vector.load %arg0[%c0, %c0_0] : memref<2x32xf32, #tpu.memory_space<vmem>>, vector<2x32xf32>
    %c0_1 = arith.constant 0 : index
    %c0_2 = arith.constant 0 : index
    %1 = vector.load %arg1[%c0_1, %c0_2] : memref<32x128xf32, #tpu.memory_space<vmem>>, vector<32x128xf32>
    %cst = arith.constant dense<0.000000e+00> : vector<2x128xf32>
    %2 = tpu.matmul %0, %1, %cst {dimension_numbers = #tpu.dot_dimension_numbers<[1], [0], [0], [1], [0, 0, 1, 1], [], []>} : vector<2x32xf32>, vector<32x128xf32>, vector<2x128xf32> -> vector<2x128xf32>
    %c0_3 = arith.constant 0 : index
    %c0_4 = arith.constant 0 : index
    %3 = vector.load %arg3[%c0_3, %c0_4] : memref<1x128xf32, #tpu.memory_space<vmem>>, vector<1x128xf32>
    %4 = vector.broadcast %3 : vector<1x128xf32> to vector<2x128xf32>
    %5 = arith.addf %2, %4 : vector<2x128xf32>
    %c0_5 = arith.constant 0 : index
    %c0_6 = arith.constant 0 : index
    %6 = vector.load %arg2[%c0_5, %c0_6] : memref<32x128xf32, #tpu.memory_space<vmem>>, vector<32x128xf32>
    %cst_7 = arith.constant 0.000000e+00 : f32
    %7 = vector.broadcast %cst_7 : f32 to vector<2x32xf32>
    %cst_8 = arith.constant 0.000000e+00 : f32
    %8 = vector.broadcast %cst_8 : f32 to vector<2x32xf32>
    %c0_i32 = arith.constant 0 : i32
    %cst_9 = arith.constant dense<0.000000e+00> : vector<2x128xf32>
    %9 = tpu.matmul %7, %6, %cst_9 {dimension_numbers = #tpu.dot_dimension_numbers<[1], [0], [0], [1], [0, 0, 1, 1], [], []>} : vector<2x32xf32>, vector<32x128xf32>, vector<2x128xf32> -> vector<2x128xf32>
    %10 = arith.addf %5, %9 : vector<2x128xf32>
    %11 = vector.extract_strided_slice %10 {offsets = [0, 0], sizes = [2, 96], strides = [1, 1]} : vector<2x128xf32> to vector<2x96xf32>
    %12 = arith.negf %11 : vector<2x96xf32>
    %13 = math.exp %12 : vector<2x96xf32>
    %cst_10 = arith.constant 1.000000e+00 : f32
    %14 = vector.broadcast %cst_10 : f32 to vector<2x96xf32>
    %15 = arith.addf %14, %13 : vector<2x96xf32>
    %16 = arith.divf %14, %15 : vector<2x96xf32>
    %17 = vector.extract_strided_slice %16 {offsets = [0, 0], sizes = [2, 32], strides = [1, 1]} : vector<2x96xf32> to vector<2x32xf32>
    %18 = vector.extract_strided_slice %16 {offsets = [0, 32], sizes = [2, 32], strides = [1, 1]} : vector<2x96xf32> to vector<2x32xf32>
    %19 = vector.extract_strided_slice %16 {offsets = [0, 64], sizes = [2, 32], strides = [1, 1]} : vector<2x96xf32> to vector<2x32xf32>
    %20 = vector.extract_strided_slice %10 {offsets = [0, 96], sizes = [2, 32], strides = [1, 1]} : vector<2x128xf32> to vector<2x32xf32>
    %21 = math.tanh %20 : vector<2x32xf32>
    %22 = arith.mulf %18, %8 : vector<2x32xf32>
    %23 = arith.mulf %17, %21 : vector<2x32xf32>
    %24 = arith.addf %22, %23 : vector<2x32xf32>
    %25 = math.tanh %24 : vector<2x32xf32>
    %26 = arith.mulf %19, %25 : vector<2x32xf32>
    %27 = vector.extract_strided_slice %26 {offsets = [0, 0], sizes = [1, 32], strides = [1, 1]} : vector<2x32xf32> to vector<1x32xf32>
    %c0_i32_11 = arith.constant 0 : i32
    %28 = arith.addi %c0_i32_11, %c0_i32 : i32
    %29 = arith.index_cast %28 : i32 to index
    %c0_12 = arith.constant 0 : index
    %30 = vector.load %arg7[%29, %c0_12] : memref<16x32xf32, #tpu.memory_space<vmem>>, vector<1x32xf32>
    tpu.vector_store %arg7[%29, %c0_12], %27 {strides = array<i32>} : memref<16x32xf32, #tpu.memory_space<vmem>>, vector<1x32xf32>,
    %31 = vector.extract_strided_slice %26 {offsets = [1, 0], sizes = [1, 32], strides = [1, 1]} : vector<2x32xf32> to vector<1x32xf32>
    %c8_i32 = arith.constant 8 : i32
    %32 = arith.addi %c8_i32, %c0_i32 : i32
    %33 = arith.index_cast %32 : i32 to index
    %c0_13 = arith.constant 0 : index
    %34 = vector.load %arg7[%33, %c0_13] : memref<16x32xf32, #tpu.memory_space<vmem>>, vector<1x32xf32>
    tpu.vector_store %arg7[%33, %c0_13], %31 {strides = array<i32>} : memref<16x32xf32, #tpu.memory_space<vmem>>, vector<1x32xf32>,
    %c1_i32 = arith.constant 1 : i32
    %cst_14 = arith.constant dense<0.000000e+00> : vector<2x128xf32>
    %35 = tpu.matmul %26, %6, %cst_14 {dimension_numbers = #tpu.dot_dimension_numbers<[1], [0], [0], [1], [0, 0, 1, 1], [], []>} : vector<2x32xf32>, vector<32x128xf32>, vector<2x128xf32> -> vector<2x128xf32>
    %36 = arith.addf %5, %35 : vector<2x128xf32>
    %37 = vector.extract_strided_slice %36 {offsets = [0, 0], sizes = [2, 96], strides = [1, 1]} : vector<2x128xf32> to vector<2x96xf32>
    %38 = arith.negf %37 : vector<2x96xf32>
    %39 = math.exp %38 : vector<2x96xf32>
    %cst_15 = arith.constant 1.000000e+00 : f32
    %40 = vector.broadcast %cst_15 : f32 to vector<2x96xf32>
    %41 = arith.addf %40, %39 : vector<2x96xf32>
    %42 = arith.divf %40, %41 : vector<2x96xf32>
    %43 = vector.extract_strided_slice %42 {offsets = [0, 0], sizes = [2, 32], strides = [1, 1]} : vector<2x96xf32> to vector<2x32xf32>
    %44 = vector.extract_strided_slice %42 {offsets = [0, 32], sizes = [2, 32], strides = [1, 1]} : vector<2x96xf32> to vector<2x32xf32>
    %45 = vector.extract_strided_slice %42 {offsets = [0, 64], sizes = [2, 32], strides = [1, 1]} : vector<2x96xf32> to vector<2x32xf32>
    %46 = vector.extract_strided_slice %36 {offsets = [0, 96], sizes = [2, 32], strides = [1, 1]} : vector<2x128xf32> to vector<2x32xf32>
    %47 = math.tanh %46 : vector<2x32xf32>
    %48 = arith.mulf %44, %24 : vector<2x32xf32>
    %49 = arith.mulf %43, %47 : vector<2x32xf32>
    %50 = arith.addf %48, %49 : vector<2x32xf32>
    %51 = math.tanh %50 : vector<2x32xf32>
    %52 = arith.mulf %45, %51 : vector<2x32xf32>
    %53 = vector.extract_strided_slice %52 {offsets = [0, 0], sizes = [1, 32], strides = [1, 1]} : vector<2x32xf32> to vector<1x32xf32>
    %c0_i32_16 = arith.constant 0 : i32
    %54 = arith.addi %c0_i32_16, %c1_i32 : i32
    %55 = arith.index_cast %54 : i32 to index
    %c0_17 = arith.constant 0 : index
    %56 = vector.load %arg7[%55, %c0_17] : memref<16x32xf32, #tpu.memory_space<vmem>>, vector<1x32xf32>
    tpu.vector_store %arg7[%55, %c0_17], %53 {strides = array<i32>} : memref<16x32xf32, #tpu.memory_space<vmem>>, vector<1x32xf32>,
    %57 = vector.extract_strided_slice %52 {offsets = [1, 0], sizes = [1, 32], strides = [1, 1]} : vector<2x32xf32> to vector<1x32xf32>
    %c8_i32_18 = arith.constant 8 : i32
    %58 = arith.addi %c8_i32_18, %c1_i32 : i32
    %59 = arith.index_cast %58 : i32 to index
    %c0_19 = arith.constant 0 : index
    %60 = vector.load %arg7[%59, %c0_19] : memref<16x32xf32, #tpu.memory_space<vmem>>, vector<1x32xf32>
    tpu.vector_store %arg7[%59, %c0_19], %57 {strides = array<i32>} : memref<16x32xf32, #tpu.memory_space<vmem>>, vector<1x32xf32>,
    %c2_i32 = arith.constant 2 : i32
    %cst_20 = arith.constant dense<0.000000e+00> : vector<2x128xf32>
    %61 = tpu.matmul %52, %6, %cst_20 {dimension_numbers = #tpu.dot_dimension_numbers<[1], [0], [0], [1], [0, 0, 1, 1], [], []>} : vector<2x32xf32>, vector<32x128xf32>, vector<2x128xf32> -> vector<2x128xf32>
    %62 = arith.addf %5, %61 : vector<2x128xf32>
    %63 = vector.extract_strided_slice %62 {offsets = [0, 0], sizes = [2, 96], strides = [1, 1]} : vector<2x128xf32> to vector<2x96xf32>
    %64 = arith.negf %63 : vector<2x96xf32>
    %65 = math.exp %64 : vector<2x96xf32>
    %cst_21 = arith.constant 1.000000e+00 : f32
    %66 = vector.broadcast %cst_21 : f32 to vector<2x96xf32>
    %67 = arith.addf %66, %65 : vector<2x96xf32>
    %68 = arith.divf %66, %67 : vector<2x96xf32>
    %69 = vector.extract_strided_slice %68 {offsets = [0, 0], sizes = [2, 32], strides = [1, 1]} : vector<2x96xf32> to vector<2x32xf32>
    %70 = vector.extract_strided_slice %68 {offsets = [0, 32], sizes = [2, 32], strides = [1, 1]} : vector<2x96xf32> to vector<2x32xf32>
    %71 = vector.extract_strided_slice %68 {offsets = [0, 64], sizes = [2, 32], strides = [1, 1]} : vector<2x96xf32> to vector<2x32xf32>
    %72 = vector.extract_strided_slice %62 {offsets = [0, 96], sizes = [2, 32], strides = [1, 1]} : vector<2x128xf32> to vector<2x32xf32>
    %73 = math.tanh %72 : vector<2x32xf32>
    %74 = arith.mulf %70, %50 : vector<2x32xf32>
    %75 = arith.mulf %69, %73 : vector<2x32xf32>
    %76 = arith.addf %74, %75 : vector<2x32xf32>
    %77 = math.tanh %76 : vector<2x32xf32>
    %78 = arith.mulf %71, %77 : vector<2x32xf32>
    %79 = vector.extract_strided_slice %78 {offsets = [0, 0], sizes = [1, 32], strides = [1, 1]} : vector<2x32xf32> to vector<1x32xf32>
    %c0_i32_22 = arith.constant 0 : i32
    %80 = arith.addi %c0_i32_22, %c2_i32 : i32
    %81 = arith.index_cast %80 : i32 to index
    %c0_23 = arith.constant 0 : index
    %82 = vector.load %arg7[%81, %c0_23] : memref<16x32xf32, #tpu.memory_space<vmem>>, vector<1x32xf32>
    tpu.vector_store %arg7[%81, %c0_23], %79 {strides = array<i32>} : memref<16x32xf32, #tpu.memory_space<vmem>>, vector<1x32xf32>,
    %83 = vector.extract_strided_slice %78 {offsets = [1, 0], sizes = [1, 32], strides = [1, 1]} : vector<2x32xf32> to vector<1x32xf32>
    %c8_i32_24 = arith.constant 8 : i32
    %84 = arith.addi %c8_i32_24, %c2_i32 : i32
    %85 = arith.index_cast %84 : i32 to index
    %c0_25 = arith.constant 0 : index
    %86 = vector.load %arg7[%85, %c0_25] : memref<16x32xf32, #tpu.memory_space<vmem>>, vector<1x32xf32>
    tpu.vector_store %arg7[%85, %c0_25], %83 {strides = array<i32>} : memref<16x32xf32, #tpu.memory_space<vmem>>, vector<1x32xf32>,
    %c3_i32 = arith.constant 3 : i32
    %cst_26 = arith.constant dense<0.000000e+00> : vector<2x128xf32>
    %87 = tpu.matmul %78, %6, %cst_26 {dimension_numbers = #tpu.dot_dimension_numbers<[1], [0], [0], [1], [0, 0, 1, 1], [], []>} : vector<2x32xf32>, vector<32x128xf32>, vector<2x128xf32> -> vector<2x128xf32>
    %88 = arith.addf %5, %87 : vector<2x128xf32>
    %89 = vector.extract_strided_slice %88 {offsets = [0, 0], sizes = [2, 96], strides = [1, 1]} : vector<2x128xf32> to vector<2x96xf32>
    %90 = arith.negf %89 : vector<2x96xf32>
    %91 = math.exp %90 : vector<2x96xf32>
    %cst_27 = arith.constant 1.000000e+00 : f32
    %92 = vector.broadcast %cst_27 : f32 to vector<2x96xf32>
    %93 = arith.addf %92, %91 : vector<2x96xf32>
    %94 = arith.divf %92, %93 : vector<2x96xf32>
    %95 = vector.extract_strided_slice %94 {offsets = [0, 0], sizes = [2, 32], strides = [1, 1]} : vector<2x96xf32> to vector<2x32xf32>
    %96 = vector.extract_strided_slice %94 {offsets = [0, 32], sizes = [2, 32], strides = [1, 1]} : vector<2x96xf32> to vector<2x32xf32>
    %97 = vector.extract_strided_slice %94 {offsets = [0, 64], sizes = [2, 32], strides = [1, 1]} : vector<2x96xf32> to vector<2x32xf32>
    %98 = vector.extract_strided_slice %88 {offsets = [0, 96], sizes = [2, 32], strides = [1, 1]} : vector<2x128xf32> to vector<2x32xf32>
    %99 = math.tanh %98 : vector<2x32xf32>
    %100 = arith.mulf %96, %76 : vector<2x32xf32>
    %101 = arith.mulf %95, %99 : vector<2x32xf32>
    %102 = arith.addf %100, %101 : vector<2x32xf32>
    %103 = math.tanh %102 : vector<2x32xf32>
    %104 = arith.mulf %97, %103 : vector<2x32xf32>
    %105 = vector.extract_strided_slice %104 {offsets = [0, 0], sizes = [1, 32], strides = [1, 1]} : vector<2x32xf32> to vector<1x32xf32>
    %c0_i32_28 = arith.constant 0 : i32
    %106 = arith.addi %c0_i32_28, %c3_i32 : i32
    %107 = arith.index_cast %106 : i32 to index
    %c0_29 = arith.constant 0 : index
    %108 = vector.load %arg7[%107, %c0_29] : memref<16x32xf32, #tpu.memory_space<vmem>>, vector<1x32xf32>
    tpu.vector_store %arg7[%107, %c0_29], %105 {strides = array<i32>} : memref<16x32xf32, #tpu.memory_space<vmem>>, vector<1x32xf32>,
    %109 = vector.extract_strided_slice %104 {offsets = [1, 0], sizes = [1, 32], strides = [1, 1]} : vector<2x32xf32> to vector<1x32xf32>
    %c8_i32_30 = arith.constant 8 : i32
    %110 = arith.addi %c8_i32_30, %c3_i32 : i32
    %111 = arith.index_cast %110 : i32 to index
    %c0_31 = arith.constant 0 : index
    %112 = vector.load %arg7[%111, %c0_31] : memref<16x32xf32, #tpu.memory_space<vmem>>, vector<1x32xf32>
    tpu.vector_store %arg7[%111, %c0_31], %109 {strides = array<i32>} : memref<16x32xf32, #tpu.memory_space<vmem>>, vector<1x32xf32>,
    %c4_i32 = arith.constant 4 : i32
    %cst_32 = arith.constant dense<0.000000e+00> : vector<2x128xf32>
    %113 = tpu.matmul %104, %6, %cst_32 {dimension_numbers = #tpu.dot_dimension_numbers<[1], [0], [0], [1], [0, 0, 1, 1], [], []>} : vector<2x32xf32>, vector<32x128xf32>, vector<2x128xf32> -> vector<2x128xf32>
    %114 = arith.addf %5, %113 : vector<2x128xf32>
    %115 = vector.extract_strided_slice %114 {offsets = [0, 0], sizes = [2, 96], strides = [1, 1]} : vector<2x128xf32> to vector<2x96xf32>
    %116 = arith.negf %115 : vector<2x96xf32>
    %117 = math.exp %116 : vector<2x96xf32>
    %cst_33 = arith.constant 1.000000e+00 : f32
    %118 = vector.broadcast %cst_33 : f32 to vector<2x96xf32>
    %119 = arith.addf %118, %117 : vector<2x96xf32>
    %120 = arith.divf %118, %119 : vector<2x96xf32>
    %121 = vector.extract_strided_slice %120 {offsets = [0, 0], sizes = [2, 32], strides = [1, 1]} : vector<2x96xf32> to vector<2x32xf32>
    %122 = vector.extract_strided_slice %120 {offsets = [0, 32], sizes = [2, 32], strides = [1, 1]} : vector<2x96xf32> to vector<2x32xf32>
    %123 = vector.extract_strided_slice %120 {offsets = [0, 64], sizes = [2, 32], strides = [1, 1]} : vector<2x96xf32> to vector<2x32xf32>
    %124 = vector.extract_strided_slice %114 {offsets = [0, 96], sizes = [2, 32], strides = [1, 1]} : vector<2x128xf32> to vector<2x32xf32>
    %125 = math.tanh %124 : vector<2x32xf32>
    %126 = arith.mulf %122, %102 : vector<2x32xf32>
    %127 = arith.mulf %121, %125 : vector<2x32xf32>
    %128 = arith.addf %126, %127 : vector<2x32xf32>
    %129 = math.tanh %128 : vector<2x32xf32>
    %130 = arith.mulf %123, %129 : vector<2x32xf32>
    %131 = vector.extract_strided_slice %130 {offsets = [0, 0], sizes = [1, 32], strides = [1, 1]} : vector<2x32xf32> to vector<1x32xf32>
    %c0_i32_34 = arith.constant 0 : i32
    %132 = arith.addi %c0_i32_34, %c4_i32 : i32
    %133 = arith.index_cast %132 : i32 to index
    %c0_35 = arith.constant 0 : index
    %134 = vector.load %arg7[%133, %c0_35] : memref<16x32xf32, #tpu.memory_space<vmem>>, vector<1x32xf32>
    tpu.vector_store %arg7[%133, %c0_35], %131 {strides = array<i32>} : memref<16x32xf32, #tpu.memory_space<vmem>>, vector<1x32xf32>,
    %135 = vector.extract_strided_slice %130 {offsets = [1, 0], sizes = [1, 32], strides = [1, 1]} : vector<2x32xf32> to vector<1x32xf32>
    %c8_i32_36 = arith.constant 8 : i32
    %136 = arith.addi %c8_i32_36, %c4_i32 : i32
    %137 = arith.index_cast %136 : i32 to index
    %c0_37 = arith.constant 0 : index
    %138 = vector.load %arg7[%137, %c0_37] : memref<16x32xf32, #tpu.memory_space<vmem>>, vector<1x32xf32>
    tpu.vector_store %arg7[%137, %c0_37], %135 {strides = array<i32>} : memref<16x32xf32, #tpu.memory_space<vmem>>, vector<1x32xf32>,
    %c5_i32 = arith.constant 5 : i32
    %cst_38 = arith.constant dense<0.000000e+00> : vector<2x128xf32>
    %139 = tpu.matmul %130, %6, %cst_38 {dimension_numbers = #tpu.dot_dimension_numbers<[1], [0], [0], [1], [0, 0, 1, 1], [], []>} : vector<2x32xf32>, vector<32x128xf32>, vector<2x128xf32> -> vector<2x128xf32>
    %140 = arith.addf %5, %139 : vector<2x128xf32>
    %141 = vector.extract_strided_slice %140 {offsets = [0, 0], sizes = [2, 96], strides = [1, 1]} : vector<2x128xf32> to vector<2x96xf32>
    %142 = arith.negf %141 : vector<2x96xf32>
    %143 = math.exp %142 : vector<2x96xf32>
    %cst_39 = arith.constant 1.000000e+00 : f32
    %144 = vector.broadcast %cst_39 : f32 to vector<2x96xf32>
    %145 = arith.addf %144, %143 : vector<2x96xf32>
    %146 = arith.divf %144, %145 : vector<2x96xf32>
    %147 = vector.extract_strided_slice %146 {offsets = [0, 0], sizes = [2, 32], strides = [1, 1]} : vector<2x96xf32> to vector<2x32xf32>
    %148 = vector.extract_strided_slice %146 {offsets = [0, 32], sizes = [2, 32], strides = [1, 1]} : vector<2x96xf32> to vector<2x32xf32>
    %149 = vector.extract_strided_slice %146 {offsets = [0, 64], sizes = [2, 32], strides = [1, 1]} : vector<2x96xf32> to vector<2x32xf32>
    %150 = vector.extract_strided_slice %140 {offsets = [0, 96], sizes = [2, 32], strides = [1, 1]} : vector<2x128xf32> to vector<2x32xf32>
    %151 = math.tanh %150 : vector<2x32xf32>
    %152 = arith.mulf %148, %128 : vector<2x32xf32>
    %153 = arith.mulf %147, %151 : vector<2x32xf32>
    %154 = arith.addf %152, %153 : vector<2x32xf32>
    %155 = math.tanh %154 : vector<2x32xf32>
    %156 = arith.mulf %149, %155 : vector<2x32xf32>
    %157 = vector.extract_strided_slice %156 {offsets = [0, 0], sizes = [1, 32], strides = [1, 1]} : vector<2x32xf32> to vector<1x32xf32>
    %c0_i32_40 = arith.constant 0 : i32
    %158 = arith.addi %c0_i32_40, %c5_i32 : i32
    %159 = arith.index_cast %158 : i32 to index
    %c0_41 = arith.constant 0 : index
    %160 = vector.load %arg7[%159, %c0_41] : memref<16x32xf32, #tpu.memory_space<vmem>>, vector<1x32xf32>
    tpu.vector_store %arg7[%159, %c0_41], %157 {strides = array<i32>} : memref<16x32xf32, #tpu.memory_space<vmem>>, vector<1x32xf32>,
    %161 = vector.extract_strided_slice %156 {offsets = [1, 0], sizes = [1, 32], strides = [1, 1]} : vector<2x32xf32> to vector<1x32xf32>
    %c8_i32_42 = arith.constant 8 : i32
    %162 = arith.addi %c8_i32_42, %c5_i32 : i32
    %163 = arith.index_cast %162 : i32 to index
    %c0_43 = arith.constant 0 : index
    %164 = vector.load %arg7[%163, %c0_43] : memref<16x32xf32, #tpu.memory_space<vmem>>, vector<1x32xf32>
    tpu.vector_store %arg7[%163, %c0_43], %161 {strides = array<i32>} : memref<16x32xf32, #tpu.memory_space<vmem>>, vector<1x32xf32>,
    %c6_i32 = arith.constant 6 : i32
    %cst_44 = arith.constant dense<0.000000e+00> : vector<2x128xf32>
    %165 = tpu.matmul %156, %6, %cst_44 {dimension_numbers = #tpu.dot_dimension_numbers<[1], [0], [0], [1], [0, 0, 1, 1], [], []>} : vector<2x32xf32>, vector<32x128xf32>, vector<2x128xf32> -> vector<2x128xf32>
    %166 = arith.addf %5, %165 : vector<2x128xf32>
    %167 = vector.extract_strided_slice %166 {offsets = [0, 0], sizes = [2, 96], strides = [1, 1]} : vector<2x128xf32> to vector<2x96xf32>
    %168 = arith.negf %167 : vector<2x96xf32>
    %169 = math.exp %168 : vector<2x96xf32>
    %cst_45 = arith.constant 1.000000e+00 : f32
    %170 = vector.broadcast %cst_45 : f32 to vector<2x96xf32>
    %171 = arith.addf %170, %169 : vector<2x96xf32>
    %172 = arith.divf %170, %171 : vector<2x96xf32>
    %173 = vector.extract_strided_slice %172 {offsets = [0, 0], sizes = [2, 32], strides = [1, 1]} : vector<2x96xf32> to vector<2x32xf32>
    %174 = vector.extract_strided_slice %172 {offsets = [0, 32], sizes = [2, 32], strides = [1, 1]} : vector<2x96xf32> to vector<2x32xf32>
    %175 = vector.extract_strided_slice %172 {offsets = [0, 64], sizes = [2, 32], strides = [1, 1]} : vector<2x96xf32> to vector<2x32xf32>
    %176 = vector.extract_strided_slice %166 {offsets = [0, 96], sizes = [2, 32], strides = [1, 1]} : vector<2x128xf32> to vector<2x32xf32>
    %177 = math.tanh %176 : vector<2x32xf32>
    %178 = arith.mulf %174, %154 : vector<2x32xf32>
    %179 = arith.mulf %173, %177 : vector<2x32xf32>
    %180 = arith.addf %178, %179 : vector<2x32xf32>
    %181 = math.tanh %180 : vector<2x32xf32>
    %182 = arith.mulf %175, %181 : vector<2x32xf32>
    %183 = vector.extract_strided_slice %182 {offsets = [0, 0], sizes = [1, 32], strides = [1, 1]} : vector<2x32xf32> to vector<1x32xf32>
    %c0_i32_46 = arith.constant 0 : i32
    %184 = arith.addi %c0_i32_46, %c6_i32 : i32
    %185 = arith.index_cast %184 : i32 to index
    %c0_47 = arith.constant 0 : index
    %186 = vector.load %arg7[%185, %c0_47] : memref<16x32xf32, #tpu.memory_space<vmem>>, vector<1x32xf32>
    tpu.vector_store %arg7[%185, %c0_47], %183 {strides = array<i32>} : memref<16x32xf32, #tpu.memory_space<vmem>>, vector<1x32xf32>,
    %187 = vector.extract_strided_slice %182 {offsets = [1, 0], sizes = [1, 32], strides = [1, 1]} : vector<2x32xf32> to vector<1x32xf32>
    %c8_i32_48 = arith.constant 8 : i32
    %188 = arith.addi %c8_i32_48, %c6_i32 : i32
    %189 = arith.index_cast %188 : i32 to index
    %c0_49 = arith.constant 0 : index
    %190 = vector.load %arg7[%189, %c0_49] : memref<16x32xf32, #tpu.memory_space<vmem>>, vector<1x32xf32>
    tpu.vector_store %arg7[%189, %c0_49], %187 {strides = array<i32>} : memref<16x32xf32, #tpu.memory_space<vmem>>, vector<1x32xf32>,
    %c7_i32 = arith.constant 7 : i32
    %cst_50 = arith.constant dense<0.000000e+00> : vector<2x128xf32>
    %191 = tpu.matmul %182, %6, %cst_50 {dimension_numbers = #tpu.dot_dimension_numbers<[1], [0], [0], [1], [0, 0, 1, 1], [], []>} : vector<2x32xf32>, vector<32x128xf32>, vector<2x128xf32> -> vector<2x128xf32>
    %192 = arith.addf %5, %191 : vector<2x128xf32>
    %193 = vector.extract_strided_slice %192 {offsets = [0, 0], sizes = [2, 96], strides = [1, 1]} : vector<2x128xf32> to vector<2x96xf32>
    %194 = arith.negf %193 : vector<2x96xf32>
    %195 = math.exp %194 : vector<2x96xf32>
    %cst_51 = arith.constant 1.000000e+00 : f32
    %196 = vector.broadcast %cst_51 : f32 to vector<2x96xf32>
    %197 = arith.addf %196, %195 : vector<2x96xf32>
    %198 = arith.divf %196, %197 : vector<2x96xf32>
    %199 = vector.extract_strided_slice %198 {offsets = [0, 0], sizes = [2, 32], strides = [1, 1]} : vector<2x96xf32> to vector<2x32xf32>
    %200 = vector.extract_strided_slice %198 {offsets = [0, 32], sizes = [2, 32], strides = [1, 1]} : vector<2x96xf32> to vector<2x32xf32>
    %201 = vector.extract_strided_slice %198 {offsets = [0, 64], sizes = [2, 32], strides = [1, 1]} : vector<2x96xf32> to vector<2x32xf32>
    %202 = vector.extract_strided_slice %192 {offsets = [0, 96], sizes = [2, 32], strides = [1, 1]} : vector<2x128xf32> to vector<2x32xf32>
    %203 = math.tanh %202 : vector<2x32xf32>
    %204 = arith.mulf %200, %180 : vector<2x32xf32>
    %205 = arith.mulf %199, %203 : vector<2x32xf32>
    %206 = arith.addf %204, %205 : vector<2x32xf32>
    %207 = math.tanh %206 : vector<2x32xf32>
    %208 = arith.mulf %201, %207 : vector<2x32xf32>
    %209 = vector.extract_strided_slice %208 {offsets = [0, 0], sizes = [1, 32], strides = [1, 1]} : vector<2x32xf32> to vector<1x32xf32>
    %c0_i32_52 = arith.constant 0 : i32
    %210 = arith.addi %c0_i32_52, %c7_i32 : i32
    %211 = arith.index_cast %210 : i32 to index
    %c0_53 = arith.constant 0 : index
    %212 = vector.load %arg7[%211, %c0_53] : memref<16x32xf32, #tpu.memory_space<vmem>>, vector<1x32xf32>
    tpu.vector_store %arg7[%211, %c0_53], %209 {strides = array<i32>} : memref<16x32xf32, #tpu.memory_space<vmem>>, vector<1x32xf32>,
    %213 = vector.extract_strided_slice %208 {offsets = [1, 0], sizes = [1, 32], strides = [1, 1]} : vector<2x32xf32> to vector<1x32xf32>
    %c8_i32_54 = arith.constant 8 : i32
    %214 = arith.addi %c8_i32_54, %c7_i32 : i32
    %215 = arith.index_cast %214 : i32 to index
    %c0_55 = arith.constant 0 : index
    %216 = vector.load %arg7[%215, %c0_55] : memref<16x32xf32, #tpu.memory_space<vmem>>, vector<1x32xf32>
    tpu.vector_store %arg7[%215, %c0_55], %213 {strides = array<i32>} : memref<16x32xf32, #tpu.memory_space<vmem>>, vector<1x32xf32>,
    %c8_i32_56 = arith.constant 8 : i32
    %c0_57 = arith.constant 0 : index
    %c0_58 = arith.constant 0 : index
    %217 = vector.load %arg7[%c0_57, %c0_58] : memref<16x32xf32, #tpu.memory_space<vmem>>, vector<16x32xf32>
    %c0_59 = arith.constant 0 : index
    %c0_60 = arith.constant 0 : index
    %218 = vector.load %arg4[%c0_59, %c0_60] : memref<32x4xf32, #tpu.memory_space<vmem>>, vector<32x4xf32>
    %cst_61 = arith.constant dense<0.000000e+00> : vector<16x4xf32>
    %219 = tpu.matmul %217, %218, %cst_61 {dimension_numbers = #tpu.dot_dimension_numbers<[1], [0], [0], [1], [0, 0, 1, 1], [], []>} : vector<16x32xf32>, vector<32x4xf32>, vector<16x4xf32> -> vector<16x4xf32>
    %c0_62 = arith.constant 0 : index
    %c0_63 = arith.constant 0 : index
    %220 = vector.load %arg5[%c0_62, %c0_63] : memref<1x4xf32, #tpu.memory_space<vmem>>, vector<1x4xf32>
    %221 = vector.broadcast %220 : vector<1x4xf32> to vector<16x4xf32>
    %222 = arith.addf %219, %221 : vector<16x4xf32>
    %c0_64 = arith.constant 0 : index
    %c0_65 = arith.constant 0 : index
    %223 = vector.load %arg6[%c0_64, %c0_65] : memref<16x4xf32, #tpu.memory_space<vmem>>, vector<16x4xf32>
    tpu.vector_store %arg6[%c0_64, %c0_65], %222 {strides = array<i32>} : memref<16x4xf32, #tpu.memory_space<vmem>>, vector<16x4xf32>,
    return
  }
}

</mosaic_0001>

<bundles_post_ra>
// kernel: tpu_custom_call.1
= control target key start
LH: loop header
LB: loop body
LE: loop exit
PB: predicated region body
PF: predicated region fallthrough
CT: control target
= control target key end

     0   :  { %11 = vsyncpa [#allocation4], 0  ;;  %s1395_s21 = smov [#allocation3]   ;;  %s1614_s0 = inlined_call_operand.vmem [shape: f32[2,32], index: 0, kind: input, shape index: {}]   ;;  %s1615_s1 = inlined_call_operand.vmem [shape: f32[32,128], index: 1, kind: input, shape index: {}]   ;;  %s1616_s2 = inlined_call_operand.hbm [shape: f32[32,128], index: 2, kind: input, shape index: {}]   ;;  %s1617_s3 = inlined_call_operand.vmem [shape: f32[1,128], index: 3, kind: input, shape index: {}]   ;;  %s1618_s4 = inlined_call_operand.vmem [shape: f32[32,4], index: 4, kind: input, shape index: {}]   ;;  %s1619_s5 = inlined_call_operand.vmem [shape: f32[1,4], index: 5, kind: input, shape index: {}]   ;;  %s1620_s6 = inlined_call_operand.vmem [shape: f32[16,4], index: 6, kind: output, shape index: {}]  }
   0x1   :  { %s21_s22 = sshll.u32 %s1395_s21, 4  ;;  %s1371_s25 = scalar_lea.hbm %s1616_s2, 512  ;;  %s22_s22 = int_to_ptr.vmem [resolvable:$true] %s21_s22 }
   0x2   :  { %p1372_p0 = scmp.ne.s32.totalorder %s1616_s2, %s1371_s25  ;;  %p1375_p1 = scmp.lt.u32.totalorder %s1371_s25, %s1616_s2 }
   0x4   :  { %p1377_p2 = pnand %p1375_p1, %p1372_p0 }
   0x6   :  { %1380 = shalt.err (!%p1377_p2)
}
   0x7   :  { %s1381_s30 = scalar_lea.vmem %s22_s22, 512  ;;  %p1386_p4 = scmp.lt.s32.totalorder %s22_s22, %s22_s22 }
   0x8   :  { %p1382_p3 = scmp.ne.s32.totalorder %s22_s22, %s1381_s30  ;;  %p1387_p5 = scmp.lt.s32.totalorder %s1381_s30, %s1381_s30 }
   0xa   :  { %p1388_p6 = por %p1387_p5, %p1386_p4 }
   0xc   :  { %p1389_p7 = pnand %p1388_p6, %p1382_p3 }
   0xe   :  { %1392 = shalt.err (!%p1389_p7)
}
   0xf   :  { %s1396_s7 = smov 128   ;;  %s1397_s8 = smov 8  }
  0x10   :  { %27 = dma.hbm_to_vmem [thread:$0]  %s1616_s2, 512, %s22_s22, [#allocation4], %s1396_s7, %s1396_s7, %s1397_s8  }
  0x11   :  { %1393 = dma.done.wait [#allocation4], 512  }
  0x12   :  { %1394 = vsyncadd [#allocation4], 4294966784  ;;  %v1398_v0 = vmov 0.0|0.0   ;;  %vm1399_vm0 = vmmov 0   ;;  %v1400_v1 = vmov 0.0   ;;  %v38_v2 = vld [vmem:[%s1615_s1] sm:$0xff] }
  0x13   :  { %1237 = vmatprep.subr.bf16.mxu0 %v1398_v0  ;;  %1243 = vmatprep.subr.bf16.mxu1 %v1398_v0  ;;  %v39_v3 = vld [vmem:[%s1615_s1 + $0x8] sm:$0xff]  ;;  %v123_v4 = vld [vmem:[#allocation3] sm:$0xff]  ;;  %v124_v6 = vld [vmem:[#allocation3 + $0x8] sm:$0xff]  ;;  %vm49_vm1 = vcmask 261120   ;;  %s1401_s20 = smov 32   ;;  %vm229_vm2 = vcmask 253952  }
  0x14   :  { %1135 = vmatprep.mubr.msk.f32.mxu0 %vm1399_vm0, %v1400_v1  ;;  %1146 = vmatprep.mubr.msk.f32.mxu1 %vm1399_vm0, %v1400_v1  ;;  %v1238_v5 = vpack.c.bf16 %v39_v3, %v38_v2  ;;  %v40_v7 = vld [vmem:[%s1615_s1 + $0x10] sm:$0xff]  ;;  %v41_v8 = vld [vmem:[%s1615_s1 + $0x18] sm:$0xff]  ;;  %v1468_v9 = vpack.c.bf16 %v124_v6, %v123_v4  ;;  %v125_v10 = vld [vmem:[#allocation3 + $0x10] sm:$0xff]  ;;  %vm231_vm3 = vcmask 254977   ;;  %vm1048_vm4 = vcmask 31744  }
  0x15   :  { %v126_v11 = vld [vmem:[#allocation3 + $0x18] sm:$0xff]  ;;  %v1241_v12 = vpack.c.bf16 %v41_v8, %v40_v7  ;;  %v37_v14 = vld [vmem:[%s1614_s0] sm:$0x3] }
  0x16   :  { %1239 = vmatpush3.bf16.msra.mxu0 %v1238_v5  ;;  %1245 = vmatpush3.bf16.msra.mxu1 %v1468_v9  ;;  %v1472_v13 = vpack.c.bf16 %v126_v11, %v125_v10  ;;  %v1056_v15 = vld [vmem:[%s1617_s3] ss:$0 sm:$0xff]  ;;  %s1402_s3 = smov 64  }
  0x17   :  { %1240 = vmatprep.subr.bf16.mxu0 %v1398_v0  ;;  %1246 = vmatprep.subr.bf16.mxu1 %v1398_v0 }
  0x1a   :  { %1242 = vmatpush3.bf16.msra.mxu0 %v1241_v12  ;;  %1248 = vmatpush3.bf16.msra.mxu1 %v1472_v13 }
  0x1b   :  { %1249 = vmatprep.subr.bf16.mxu0 %v1398_v0  ;;  %1255 = vmatprep.subr.bf16.mxu1 %v1398_v0 }
  0x1d   :  { %1136 = vmatmul.mubr.msk.f32.vlgmr.msra.gmra.mrb[0].mxu0 %vm49_vm1, %v37_v14  ;;  %1147 = vmatmul.mubr.f32.vlgmr.msra.gmra.mrb[0].mxu1 %v1400_v1 }
  0x1e   :  { %1251 = vmatpush3.bf16.msra.mxu0 %v1468_v9  ;;  %1157 = vmatprep.mubr.msk.f32.mxu0 %vm1399_vm0, %v1400_v1 }
  0x1f   :  { %1252 = vmatprep.subr.bf16.mxu0 %v1398_v0  ;;  %1257 = vmatpush3.bf16.msra.mxu1 %v1468_v9 }
  0x20   :  { %1168 = vmatprep.mubr.msk.f32.mxu1 %vm1399_vm0, %v1400_v1  ;;  %1258 = vmatprep.subr.bf16.mxu1 %v1398_v0 }
  0x22   :  { %1254 = vmatpush3.bf16.msra.mxu0 %v1472_v13 }
  0x23   :  { %1261 = vmatprep.subr.bf16.mxu0 %v1398_v0  ;;  %1260 = vmatpush3.bf16.msra.mxu1 %v1472_v13 }
  0x24   :  { %1267 = vmatprep.subr.bf16.mxu1 %v1398_v0 }
  0xf0   :  { %v119_v16 = vpop.f32.mrb[0].mxu0  ;;  %v196_v19 = vpop.f32.mrb[0].mxu1 }
  0xf1   :  { %v1498_v17 = vadd.f32 %v1056_v15, %v119_v16  ;;  %v1137_v18 = vpop.f32.mrb[1].mxu0  ;;  %v1148_v20 = vpop.f32.mrb[1].mxu1 }
  0xf3   :  { %v200_v21 = vadd.f32 %v196_v19, %v1498_v17 }
  0xf5   :  { %1307 = vtanh.f32 %v200_v21  ;;  %v1058_v23 = vmul.f32 -1.442695, %v200_v21 }
  0xf7   :  { %1309 = vpow2.f32 %v1058_v23 }
  0xff   :  { %v1308_v22 = vpop.eup %1307 }
 0x100   :  { %210 = vrot.lane.b32.xlu0 %v1308_v22, %s1401_s20 }
 0x101   :  { %v1310_v24 = vpop.eup %1309 }
 0x102   :  { %v204_v25 = vadd.f32 1.0, %v1310_v24 }
 0x104   :  { %1311 = vrcp.f32 %v204_v25 }
 0x10e   :  { %v1312_v26 = vpop.eup %1311 }
 0x10f   :  { %v208_v29 = vmul.f32 0.0, %v1312_v26 }
 0x172   :  { %v211_v27 = vpop.permute.xlu0 %210 }
 0x173   :  { %v213_v28 = vmul.f32 %v1312_v26, %v211_v27 }
 0x175   :  { %215 = vrot.lane.b32.xlu0 %v213_v28, %s1401_s20 }
 0x1e7   :  { %v216_v30 = vpop.permute.xlu0 %215 }
 0x1e8   :  { %v218_v31 = vadd.f32 %v216_v30, %v208_v29 }
 0x1ea   :  { %1313 = vtanh.f32 %v218_v31 }
 0x1f4   :  { %v1314_v32 = vpop.eup %1313 }
 0x1f5   :  { %221 = vrot.lane.b32.xlu1 %v1314_v32, %s1401_s20 }
 0x267   :  { %v222_v33 = vpop.permute.xlu1 %221 }
 0x268   :  { %v224_v34 = vmul.f32 %v1312_v26, %v222_v33 }
 0x26a   :  { %226 = vrot.lane.b32.xlu1 %v224_v34, %s1402_s3 }
 0x2dc   :  { %v227_v35 = vpop.permute.xlu1 %226 }
 0x2dd   :  { %230 = vst.msk [vmem:[#allocation2] sm:$0x1] %vm229_vm2, %v227_v35  ;;  %1158 = vmatmul.mubr.msk.f32.vlgmr.msra.gmra.mrb[2].mxu0 %vm49_vm1, %v227_v35 }
 0x2de   :  { %232 = vst.msk [vmem:[#allocation2 + $0x7] sm:$0x2] %vm231_vm3, %v227_v35  ;;  %1263 = vmatpush3.bf16.msra.mxu0 %v1468_v9  ;;  %1179 = vmatprep.mubr.msk.f32.mxu0 %vm1399_vm0, %v1400_v1 }
 0x2df   :  { %1264 = vmatprep.subr.bf16.mxu0 %v1398_v0 }
 0x2e2   :  { %1266 = vmatpush3.bf16.msra.mxu0 %v1472_v13 }
 0x2e3   :  { %1273 = vmatprep.subr.bf16.mxu0 %v1398_v0 }
 0x3b0   :  { %v301_v36 = vpop.f32.mrb[2].mxu0 }
 0x3b1   :  { %v305_v37 = vadd.f32 %v301_v36, %v1498_v17  ;;  %v1159_v38 = vpop.f32.mrb[3].mxu0 }
 0x3b3   :  { %1315 = vtanh.f32 %v305_v37  ;;  %v1060_v40 = vmul.f32 -1.442695, %v305_v37 }
 0x3b5   :  { %1317 = vpow2.f32 %v1060_v40 }
 0x3bd   :  { %v1316_v39 = vpop.eup %1315 }
 0x3be   :  { %315 = vrot.lane.b32.xlu0 %v1316_v39, %s1401_s20 }
 0x3bf   :  { %v1318_v41 = vpop.eup %1317 }
 0x3c0   :  { %v309_v42 = vadd.f32 1.0, %v1318_v41 }
 0x3c2   :  { %1319 = vrcp.f32 %v309_v42 }
 0x3cc   :  { %v1320_v43 = vpop.eup %1319 }
 0x3cd   :  { %v313_v46 = vmul.f32 %v1320_v43, %v218_v31 }
 0x430   :  { %v316_v44 = vpop.permute.xlu0 %315 }
 0x431   :  { %v318_v45 = vmul.f32 %v1320_v43, %v316_v44 }
 0x433   :  { %320 = vrot.lane.b32.xlu1 %v318_v45, %s1401_s20 }
 0x4a5   :  { %v321_v47 = vpop.permute.xlu1 %320 }
 0x4a6   :  { %v323_v48 = vadd.f32 %v321_v47, %v313_v46 }
 0x4a8   :  { %1321 = vtanh.f32 %v323_v48 }
 0x4b2   :  { %v1322_v49 = vpop.eup %1321 }
 0x4b3   :  { %326 = vrot.lane.b32.xlu0 %v1322_v49, %s1401_s20 }
 0x525   :  { %v327_v50 = vpop.permute.xlu0 %326 }
 0x526   :  { %v329_v51 = vmul.f32 %v1320_v43, %v327_v50 }
 0x528   :  { %331 = vrot.lane.b32.xlu1 %v329_v51, %s1402_s3 }
 0x59a   :  { %v332_v52 = vpop.permute.xlu1 %331 }
 0x59b   :  { %334 = vst.msk [vmem:[#allocation2 + $0x1] sm:$0x1] %vm229_vm2, %v332_v52  ;;  %1169 = vmatmul.mubr.msk.f32.vlgmr.msra.gmra.mrb[2].mxu1 %vm49_vm1, %v332_v52 }
 0x59c   :  { %335 = vst.msk [vmem:[#allocation2 + $0x8] sm:$0x2] %vm231_vm3, %v332_v52  ;;  %1269 = vmatpush3.bf16.msra.mxu1 %v1468_v9  ;;  %1190 = vmatprep.mubr.msk.f32.mxu1 %vm1399_vm0, %v1400_v1 }
 0x59d   :  { %1270 = vmatprep.subr.bf16.mxu1 %v1398_v0 }
 0x5a0   :  { %1272 = vmatpush3.bf16.msra.mxu1 %v1472_v13 }
 0x5a1   :  { %1279 = vmatprep.subr.bf16.mxu1 %v1398_v0 }
 0x66e   :  { %v404_v53 = vpop.f32.mrb[2].mxu1 }
 0x66f   :  { %v408_v54 = vadd.f32 %v404_v53, %v1498_v17  ;;  %v1170_v55 = vpop.f32.mrb[3].mxu1 }
 0x671   :  { %1323 = vtanh.f32 %v408_v54  ;;  %v1062_v57 = vmul.f32 -1.442695, %v408_v54 }
 0x673   :  { %1325 = vpow2.f32 %v1062_v57 }
 0x67b   :  { %v1324_v56 = vpop.eup %1323 }
 0x67c   :  { %418 = vrot.lane.b32.xlu0 %v1324_v56, %s1401_s20 }
 0x67d   :  { %v1326_v58 = vpop.eup %1325 }
 0x67e   :  { %v412_v59 = vadd.f32 1.0, %v1326_v58 }
 0x680   :  { %1327 = vrcp.f32 %v412_v59 }
 0x68a   :  { %v1328_v60 = vpop.eup %1327 }
 0x68b   :  { %v416_v63 = vmul.f32 %v1328_v60, %v323_v48 }
 0x6ee   :  { %v419_v61 = vpop.permute.xlu0 %418 }
 0x6ef   :  { %v421_v62 = vmul.f32 %v1328_v60, %v419_v61 }
 0x6f1   :  { %423 = vrot.lane.b32.xlu1 %v421_v62, %s1401_s20 }
 0x763   :  { %v424_v2 = vpop.permute.xlu1 %423 }
 0x764   :  { %v426_v3 = vadd.f32 %v424_v2, %v416_v63 }
 0x766   :  { %1329 = vtanh.f32 %v426_v3 }
 0x770   :  { %v1330_v4 = vpop.eup %1329 }
 0x771   :  { %429 = vrot.lane.b32.xlu0 %v1330_v4, %s1401_s20 }
 0x7e3   :  { %v430_v5 = vpop.permute.xlu0 %429 }
 0x7e4   :  { %v432_v6 = vmul.f32 %v1328_v60, %v430_v5 }
 0x7e6   :  { %434 = vrot.lane.b32.xlu1 %v432_v6, %s1402_s3 }
 0x858   :  { %v435_v7 = vpop.permute.xlu1 %434 }
 0x859   :  { %437 = vst.msk [vmem:[#allocation2 + $0x2] sm:$0x1] %vm229_vm2, %v435_v7  ;;  %1180 = vmatmul.mubr.msk.f32.vlgmr.msra.gmra.mrb[4].mxu0 %vm49_vm1, %v435_v7 }
 0x85a   :  { %438 = vst.msk [vmem:[#allocation2 + $0x9] sm:$0x2] %vm231_vm3, %v435_v7  ;;  %1275 = vmatpush3.bf16.msra.mxu0 %v1468_v9  ;;  %1201 = vmatprep.mubr.msk.f32.mxu0 %vm1399_vm0, %v1400_v1 }
 0x85b   :  { %1276 = vmatprep.subr.bf16.mxu0 %v1398_v0 }
 0x85e   :  { %1278 = vmatpush3.bf16.msra.mxu0 %v1472_v13 }
 0x85f   :  { %1285 = vmatprep.subr.bf16.mxu0 %v1398_v0 }
 0x92c   :  { %v507_v8 = vpop.f32.mrb[4].mxu0 }
 0x92d   :  { %v511_v10 = vadd.f32 %v507_v8, %v1498_v17  ;;  %v1181_v11 = vpop.f32.mrb[5].mxu0 }
 0x92f   :  { %1331 = vtanh.f32 %v511_v10  ;;  %v1064_v14 = vmul.f32 -1.442695, %v511_v10 }
 0x931   :  { %1333 = vpow2.f32 %v1064_v14 }
 0x939   :  { %v1332_v12 = vpop.eup %1331 }
 0x93a   :  { %521 = vrot.lane.b32.xlu0 %v1332_v12, %s1401_s20 }
 0x93b   :  { %v1334_v15 = vpop.eup %1333 }
 0x93c   :  { %v515_v16 = vadd.f32 1.0, %v1334_v15 }
 0x93e   :  { %1335 = vrcp.f32 %v515_v16 }
 0x948   :  { %v1336_v18 = vpop.eup %1335 }
 0x949   :  { %v519_v21 = vmul.f32 %v1336_v18, %v426_v3 }
 0x9ac   :  { %v522_v19 = vpop.permute.xlu0 %521 }
 0x9ad   :  { %v524_v20 = vmul.f32 %v1336_v18, %v522_v19 }
 0x9af   :  { %526 = vrot.lane.b32.xlu1 %v524_v20, %s1401_s20 }
 0xa21   :  { %v527_v22 = vpop.permute.xlu1 %526 }
 0xa22   :  { %v529_v23 = vadd.f32 %v527_v22, %v519_v21 }
 0xa24   :  { %1337 = vtanh.f32 %v529_v23 }
 0xa2e   :  { %v1338_v24 = vpop.eup %1337 }
 0xa2f   :  { %532 = vrot.lane.b32.xlu0 %v1338_v24, %s1401_s20 }
 0xaa1   :  { %v533_v25 = vpop.permute.xlu0 %532 }
 0xaa2   :  { %v535_v26 = vmul.f32 %v1336_v18, %v533_v25 }
 0xaa4   :  { %537 = vrot.lane.b32.xlu1 %v535_v26, %s1402_s3 }
 0xb16   :  { %v538_v27 = vpop.permute.xlu1 %537 }
 0xb17   :  { %540 = vst.msk [vmem:[#allocation2 + $0x3] sm:$0x1] %vm229_vm2, %v538_v27  ;;  %1191 = vmatmul.mubr.msk.f32.vlgmr.msra.gmra.mrb[4].mxu1 %vm49_vm1, %v538_v27 }
 0xb18   :  { %541 = vst.msk [vmem:[#allocation2 + $0xa] sm:$0x2] %vm231_vm3, %v538_v27  ;;  %1281 = vmatpush3.bf16.msra.mxu1 %v1468_v9  ;;  %1212 = vmatprep.mubr.msk.f32.mxu1 %vm1399_vm0, %v1400_v1 }
 0xb19   :  { %1282 = vmatprep.subr.bf16.mxu1 %v1398_v0 }
 0xb1c   :  { %1284 = vmatpush3.bf16.msra.mxu1 %v1472_v13 }
 0xbea   :  { %v610_v28 = vpop.f32.mrb[4].mxu1 }
 0xbeb   :  { %v614_v29 = vadd.f32 %v610_v28, %v1498_v17  ;;  %v1192_v30 = vpop.f32.mrb[5].mxu1 }
 0xbec   :  { %v957_v30 = vld [vmem:[%s1618_s4 + $0x8] sm:$0xff] }
 0xbed   :  { %1339 = vtanh.f32 %v614_v29  ;;  %v1066_v32 = vmul.f32 -1.442695, %v614_v29  ;;  %v956_v29 = vld [vmem:[%s1618_s4] sm:$0xff] }
 0xbef   :  { %1341 = vpow2.f32 %v1066_v32  ;;  %v958_v32 = vld [vmem:[%s1618_s4 + $0x10] sm:$0xff] }
 0xbf7   :  { %v1340_v31 = vpop.eup %1339 }
 0xbf8   :  { %624 = vrot.lane.b32.xlu0 %v1340_v31, %s1401_s20  ;;  %v1291_v31 = vpack.c.bf16 %v957_v30, %v956_v29 }
 0xbf9   :  { %v1342_v33 = vpop.eup %1341 }
 0xbfa   :  { %v618_v34 = vadd.f32 1.0, %v1342_v33  ;;  %v959_v33 = vld [vmem:[%s1618_s4 + $0x18] sm:$0xff]  ;;  %1292 = vmatprep.subr.bf16.mxu1 %v1291_v31 }
 0xbfc   :  { %1343 = vrcp.f32 %v618_v34  ;;  %v1295_v34 = vpack.c.bf16 %v959_v33, %v958_v32 }
 0xc06   :  { %v1344_v35 = vpop.eup %1343 }
 0xc07   :  { %v622_v38 = vmul.f32 %v1344_v35, %v529_v23 }
 0xc6a   :  { %v625_v36 = vpop.permute.xlu0 %624 }
 0xc6b   :  { %v627_v37 = vmul.f32 %v1344_v35, %v625_v36 }
 0xc6d   :  { %629 = vrot.lane.b32.xlu1 %v627_v37, %s1401_s20 }
 0xcdf   :  { %v630_v39 = vpop.permute.xlu1 %629 }
 0xce0   :  { %v632_v40 = vadd.f32 %v630_v39, %v622_v38 }
 0xce2   :  { %1345 = vtanh.f32 %v632_v40 }
 0xcec   :  { %v1346_v41 = vpop.eup %1345 }
 0xced   :  { %635 = vrot.lane.b32.xlu0 %v1346_v41, %s1401_s20 }
 0xd5f   :  { %v636_v42 = vpop.permute.xlu0 %635 }
 0xd60   :  { %v638_v43 = vmul.f32 %v1344_v35, %v636_v42 }
 0xd62   :  { %640 = vrot.lane.b32.xlu1 %v638_v43, %s1402_s3 }
 0xdd4   :  { %v641_v44 = vpop.permute.xlu1 %640 }
 0xdd5   :  { %643 = vst.msk [vmem:[#allocation2 + $0x4] sm:$0x1] %vm229_vm2, %v641_v44  ;;  %1202 = vmatmul.mubr.msk.f32.vlgmr.msra.gmra.mrb[6].mxu0 %vm49_vm1, %v641_v44 }
 0xdd6   :  { %644 = vst.msk [vmem:[#allocation2 + $0xb] sm:$0x2] %vm231_vm3, %v641_v44  ;;  %1287 = vmatpush3.bf16.msra.mxu0 %v1468_v9  ;;  %1223 = vmatprep.mubr.msk.f32.mxu0 %vm1399_vm0, %v1400_v1 }
 0xdd7   :  { %1288 = vmatprep.subr.bf16.mxu0 %v1398_v0 }
 0xdda   :  { %1290 = vmatpush3.bf16.msra.mxu0 %v1472_v13 }
 0xea8   :  { %v713_v45 = vpop.f32.mrb[6].mxu0 }
 0xea9   :  { %v717_v46 = vadd.f32 %v713_v45, %v1498_v17  ;;  %v1203_v47 = vpop.f32.mrb[7].mxu0 }
 0xeab   :  { %1347 = vtanh.f32 %v717_v46  ;;  %v1068_v49 = vmul.f32 -1.442695, %v717_v46 }
 0xead   :  { %1349 = vpow2.f32 %v1068_v49 }
 0xeb5   :  { %v1348_v48 = vpop.eup %1347 }
 0xeb6   :  { %727 = vrot.lane.b32.xlu0 %v1348_v48, %s1401_s20 }
 0xeb7   :  { %v1350_v50 = vpop.eup %1349 }
 0xeb8   :  { %v721_v51 = vadd.f32 1.0, %v1350_v50 }
 0xeba   :  { %1351 = vrcp.f32 %v721_v51 }
 0xec4   :  { %v1352_v9 = vpop.eup %1351 }
 0xec5   :  { %v725_v0 = vmul.f32 %v1352_v9, %v632_v40  ;;  %v1073_v40 = vld [vmem:[%s1619_s5] ss:$0 sm:$0xff] }
 0xf28   :  { %v728_v52 = vpop.permute.xlu0 %727 }
 0xf29   :  { %v730_v1 = vmul.f32 %v1352_v9, %v728_v52 }
 0xf2b   :  { %732 = vrot.lane.b32.xlu1 %v730_v1, %s1401_s20 }
 0xf9d   :  { %v733_v13 = vpop.permute.xlu1 %732 }
 0xf9e   :  { %v735_v53 = vadd.f32 %v733_v13, %v725_v0 }
 0xfa0   :  { %1353 = vtanh.f32 %v735_v53 }
 0xfaa   :  { %v1354_v54 = vpop.eup %1353 }
 0xfab   :  { %738 = vrot.lane.b32.xlu0 %v1354_v54, %s1401_s20 }
0x101d   :  { %v739_v55 = vpop.permute.xlu0 %738 }
0x101e   :  { %v741_v56 = vmul.f32 %v1352_v9, %v739_v55 }
0x1020   :  { %743 = vrot.lane.b32.xlu1 %v741_v56, %s1402_s3 }
0x1092   :  { %v744_v57 = vpop.permute.xlu1 %743 }
0x1093   :  { %746 = vst.msk [vmem:[#allocation2 + $0x5] sm:$0x1] %vm229_vm2, %v744_v57  ;;  %1213 = vmatmul.mubr.msk.f32.vlgmr.msra.gmra.mrb[6].mxu1 %vm49_vm1, %v744_v57 }
0x1094   :  { %747 = vst.msk [vmem:[#allocation2 + $0xc] sm:$0x2] %vm231_vm3, %v744_v57  ;;  %1294 = vmatpush3.bf16.msra.mxu1 %v1291_v31 }
0x1095   :  { %1296 = vmatprep.subr.bf16.mxu1 %v1295_v34 }
0x1098   :  { %1298 = vmatpush3.bf16.msra.mxu1 %v1295_v34 }
0x1166   :  { %v816_v58 = vpop.f32.mrb[6].mxu1 }
0x1167   :  { %v820_v59 = vadd.f32 %v816_v58, %v1498_v17  ;;  %v1214_v60 = vpop.f32.mrb[7].mxu1 }
0x1169   :  { %1355 = vtanh.f32 %v820_v59  ;;  %v1070_v62 = vmul.f32 -1.442695, %v820_v59 }
0x116b   :  { %1357 = vpow2.f32 %v1070_v62 }
0x1173   :  { %v1356_v61 = vpop.eup %1355 }
0x1174   :  { %830 = vrot.lane.b32.xlu0 %v1356_v61, %s1401_s20 }
0x1175   :  { %v1358_v63 = vpop.eup %1357 }
0x1176   :  { %v824_v2 = vadd.f32 1.0, %v1358_v63 }
0x1178   :  { %1359 = vrcp.f32 %v824_v2 }
0x1182   :  { %v1360_v3 = vpop.eup %1359 }
0x1183   :  { %v828_v6 = vmul.f32 %v1360_v3, %v735_v53 }
0x11e6   :  { %v831_v4 = vpop.permute.xlu0 %830 }
0x11e7   :  { %v833_v5 = vmul.f32 %v1360_v3, %v831_v4 }
0x11e9   :  { %835 = vrot.lane.b32.xlu1 %v833_v5, %s1401_s20 }
0x125b   :  { %v836_v7 = vpop.permute.xlu1 %835 }
0x125c   :  { %v838_v8 = vadd.f32 %v836_v7, %v828_v6 }
0x125e   :  { %1361 = vtanh.f32 %v838_v8 }
0x1268   :  { %v1362_v10 = vpop.eup %1361 }
0x1269   :  { %841 = vrot.lane.b32.xlu0 %v1362_v10, %s1401_s20 }
0x12db   :  { %v842_v11 = vpop.permute.xlu0 %841 }
0x12dc   :  { %v844_v12 = vmul.f32 %v1360_v3, %v842_v11 }
0x12de   :  { %846 = vrot.lane.b32.xlu1 %v844_v12, %s1402_s3 }
0x1350   :  { %v847_v14 = vpop.permute.xlu1 %846 }
0x1351   :  { %849 = vst.msk [vmem:[#allocation2 + $0x6] sm:$0x1] %vm229_vm2, %v847_v14  ;;  %1224 = vmatmul.mubr.msk.f32.vlgmr.msra.gmra.mrb[8].mxu0 %vm49_vm1, %v847_v14 }
0x1352   :  { %850 = vst.msk [vmem:[#allocation2 + $0xd] sm:$0x2] %vm231_vm3, %v847_v14 }
0x1424   :  { %v919_v15 = vpop.f32.mrb[8].mxu0 }
0x1425   :  { %v923_v16 = vadd.f32 %v919_v15, %v1498_v17  ;;  %v1225_v18 = vpop.f32.mrb[9].mxu0 }
0x1427   :  { %1363 = vtanh.f32 %v923_v16  ;;  %v1072_v20 = vmul.f32 -1.442695, %v923_v16 }
0x1429   :  { %1365 = vpow2.f32 %v1072_v20 }
0x1431   :  { %v1364_v19 = vpop.eup %1363 }
0x1432   :  { %933 = vrot.lane.b32.xlu0 %v1364_v19, %s1401_s20 }
0x1433   :  { %v1366_v21 = vpop.eup %1365 }
0x1434   :  { %v927_v22 = vadd.f32 1.0, %v1366_v21 }
0x1436   :  { %1367 = vrcp.f32 %v927_v22 }
0x1440   :  { %v1368_v23 = vpop.eup %1367 }
0x1441   :  { %v931_v26 = vmul.f32 %v1368_v23, %v838_v8 }
0x14a4   :  { %v934_v24 = vpop.permute.xlu0 %933 }
0x14a5   :  { %v936_v25 = vmul.f32 %v1368_v23, %v934_v24 }
0x14a7   :  { %938 = vrot.lane.b32.xlu1 %v936_v25, %s1401_s20 }
0x1519   :  { %v939_v27 = vpop.permute.xlu1 %938 }
0x151a   :  { %v941_v28 = vadd.f32 %v939_v27, %v931_v26 }
0x151c   :  { %1369 = vtanh.f32 %v941_v28 }
0x1526   :  { %v1370_v17 = vpop.eup %1369 }
0x1527   :  { %944 = vrot.lane.b32.xlu0 %v1370_v17, %s1401_s20 }
0x1599   :  { %v945_v35 = vpop.permute.xlu0 %944 }
0x159a   :  { %v947_v36 = vmul.f32 %v1368_v23, %v945_v35 }
0x159c   :  { %949 = vrot.lane.b32.xlu1 %v947_v36, %s1402_s3 }
0x160e   :  { %v950_v37 = vpop.permute.xlu1 %949 }
0x160f   :  { %952 = vst.msk [vmem:[#allocation2 + $0x7] sm:$0x1] %vm229_vm2, %v950_v37 }
0x1610   :  { %953 = vst.msk [vmem:[#allocation2 + $0xe] sm:$0x2] %vm231_vm3, %v950_v37 }
0x1616   :  { %v954_v38 = vld [vmem:[#allocation2] sm:$0xff] }
0x1617   :  { %v955_v39 = vld [vmem:[#allocation2 + $0x8] sm:$0xff]  ;;  %1234 = vmatprep.mubr.msk.f32.mxu1 %vm49_vm1, %v954_v38 }
0x1618   :  { %1235 = vmatmul.mubr.msk.f32.vlgmr.msra.gmra.mrb[8].mxu1 %vm49_vm1, %v955_v39 }
0x16eb   :  { %v1236_v41 = vpop.f32.mrb[8].mxu1 }
0x16ec   :  { %v1045_v42 = vadd.f32 %v1236_v41, %v1073_v40  ;;  %v1039_v43 = vpop.f32.mrb[9].mxu1 }
0x16ed   :  { %v1040_v44 = vadd.f32 %v1073_v40, %v1039_v43 }
0x16ee   :  { %1050 = vst.msk [vmem:[%s1620_s6 + $0x8] sm:$0xff] %vm1048_vm4, %v1045_v42 }
0x16ef   :  { %1049 = vst.msk [vmem:[%s1620_s6] sm:$0xff] %vm1048_vm4, %v1040_v44 }
0x16f0   :  { %1055 = vsyncpa [#allocation4], 1 }

</bundles_post_ra>
